<compile_context>
chip_gen: v6e
topology: v6e:2x2x1
jax: 0.10.0
libtpu: 0.0.40
codegen_flags: <defaults>
</compile_context>

<pallas_src>
import jax
import jax.numpy as jnp
from jax import lax
from jax.experimental import pallas as pl
from jax.experimental.pallas import tpu as pltpu


def _linear_kernel(x_ref, w_ref, b_ref, o_ref):
    # x_ref: (bm, K)   row block of the (flattened) input
    # w_ref: (N, K)    full weight in torch layout (out_features, in_features)
    # b_ref: (1, N)    bias
    # o_ref: (bm, N)   output block (classes on the lane axis, full extent)
    acc = lax.dot_general(
        x_ref[...], w_ref[...],
        dimension_numbers=(((1,), (1,)), ((), ())),   # contract K with K
        preferred_element_type=jnp.float32)
    o_ref[...] = (acc + b_ref[...].astype(jnp.float32)).astype(o_ref.dtype)


def _pick_row_block(m):
    """Whole problem in one step when small; otherwise an (8-multiple) tile."""
    if m <= 512:
        return m
    for bm in (512, 256, 128, 64, 32, 16, 8):
        if m % bm == 0:
            return bm
    return m  # fallback: single full-extent block


def classifier_forward(x, weight, bias):
    """Classifier.forward: y = self.fc(x) = x @ weight.T + bias.

    x: (..., feat_in); weight: (num_classes, feat_in); bias: (num_classes,).
    Returns (..., num_classes) in x.dtype.
    """
    num_classes, feat_in = weight.shape
    lead = x.shape[:-1]
    x2 = x.reshape(-1, feat_in)                       # flatten leading dims
    m = x2.shape[0]
    bm = _pick_row_block(m)
    grid = (m // bm,)
    bias2 = bias.reshape(1, num_classes)

    out = pl.pallas_call(
        _linear_kernel,
        out_shape=jax.ShapeDtypeStruct((m, num_classes), x.dtype),
        grid_spec=pltpu.PrefetchScalarGridSpec(
            num_scalar_prefetch=0,
            grid=grid,
            in_specs=[
                pl.BlockSpec((bm, feat_in), lambda i: (i, 0)),
                pl.BlockSpec((num_classes, feat_in), lambda i: (0, 0)),
                pl.BlockSpec((1, num_classes), lambda i: (0, 0)),
            ],
            out_specs=pl.BlockSpec((bm, num_classes), lambda i: (i, 0)),
        ),
        compiler_params=pltpu.CompilerParams(
            dimension_semantics=("parallel",)),
    )(x2, weight, bias2)

    return out.reshape(*lead, num_classes)


def _reference(x, weight, bias):
    return jnp.matmul(x, weight.T) + bias


if __name__ == "__main__":
    key = jax.random.PRNGKey(0)
    k1, k2, k3 = jax.random.split(key, 3)

    batch, feat_in, num_classes = 2, 32, 10

    x = jax.random.normal(k1, (batch, feat_in), jnp.float32)
    # kaiming_normal_ (fan_in, gain sqrt(2)) like _weights_init
    weight = jax.random.normal(k2, (num_classes, feat_in), jnp.float32) * \
        jnp.sqrt(2.0 / feat_in)
    # nn.Linear default bias init: U(-1/sqrt(fan_in), 1/sqrt(fan_in))
    bound = 1.0 / jnp.sqrt(jnp.float32(feat_in))
    bias = jax.random.uniform(k3, (num_classes,), jnp.float32, -bound, bound)

    out = classifier_forward(x, weight, bias)
    out = jax.block_until_ready(out)

    assert out.shape == (batch, num_classes), out.shape
    ref = _reference(x, weight, bias)
    max_err = float(jnp.max(jnp.abs(out - ref)))
    assert max_err < 1e-4, f"mismatch vs reference: {max_err}"

    print("KERNEL_OK")
</pallas_src>

<mosaic_0001>
module attributes {stable_mosaic.version = 11 : i64} {
  func.func @_linear_kernel(%arg0: i32, %arg1: memref<2x32xf32, #tpu.memory_space<vmem>>, %arg2: memref<10x32xf32, #tpu.memory_space<vmem>>, %arg3: memref<1x10xf32, #tpu.memory_space<vmem>>, %arg4: memref<2x10xf32, #tpu.memory_space<vmem>>) attributes {dimension_semantics = [#tpu.dimension_semantics<parallel>], iteration_bounds = array<i64: 1>, scalar_prefetch = 0 : i64, scratch_operands = 0 : i64, tpu.core_type = #tpu.core_type<tc>, window_params = [{transform_indices = @transform_0, window_bounds = array<i64: 2, 32>}, {pipeline_mode = #tpu.pipeline_mode<synchronous>, transform_indices = @transform_1, window_bounds = array<i64: 10, 32>}, {pipeline_mode = #tpu.pipeline_mode<synchronous>, transform_indices = @transform_2, window_bounds = array<i64: 1, 10>}, {transform_indices = @transform_3, window_bounds = array<i64: 2, 10>}]} {
    %c0 = arith.constant 0 : index
    %c0_0 = arith.constant 0 : index
    %0 = vector.load %arg1[%c0, %c0_0] : memref<2x32xf32, #tpu.memory_space<vmem>>, vector<2x32xf32>
    %c0_1 = arith.constant 0 : index
    %c0_2 = arith.constant 0 : index
    %1 = vector.load %arg2[%c0_1, %c0_2] : memref<10x32xf32, #tpu.memory_space<vmem>>, vector<10x32xf32>
    %cst = arith.constant dense<0.000000e+00> : vector<2x10xf32>
    %2 = tpu.matmul %0, %1, %cst {dimension_numbers = #tpu.dot_dimension_numbers<[1], [1], [0], [0], [0, 0, 1, 0], [], []>} : vector<2x32xf32>, vector<10x32xf32>, vector<2x10xf32> -> vector<2x10xf32>
    %c0_3 = arith.constant 0 : index
    %c0_4 = arith.constant 0 : index
    %3 = vector.load %arg3[%c0_3, %c0_4] : memref<1x10xf32, #tpu.memory_space<vmem>>, vector<1x10xf32>
    %4 = vector.broadcast %3 : vector<1x10xf32> to vector<2x10xf32>
    %5 = arith.addf %2, %4 : vector<2x10xf32>
    %c0_5 = arith.constant 0 : index
    %c0_6 = arith.constant 0 : index
    %6 = vector.load %arg4[%c0_5, %c0_6] : memref<2x10xf32, #tpu.memory_space<vmem>>, vector<2x10xf32>
    tpu.vector_store %arg4[%c0_5, %c0_6], %5 {strides = array<i32>} : memref<2x10xf32, #tpu.memory_space<vmem>>, vector<2x10xf32>,
    return
  }
  func.func @transform_0(%arg0: i32) -> (i32, i32) {
    %c0_i32 = arith.constant 0 : i32
    %c0_i32_0 = arith.constant 0 : i32
    return %arg0, %c0_i32 : i32, i32
  }
  func.func @transform_1(%arg0: i32) -> (i32, i32) {
    %c0_i32 = arith.constant 0 : i32
    %c0_i32_0 = arith.constant 0 : i32
    %c0_i32_1 = arith.constant 0 : i32
    return %c0_i32, %c0_i32_0 : i32, i32
  }
  func.func @transform_2(%arg0: i32) -> (i32, i32) {
    %c0_i32 = arith.constant 0 : i32
    %c0_i32_0 = arith.constant 0 : i32
    %c0_i32_1 = arith.constant 0 : i32
    return %c0_i32, %c0_i32_0 : i32, i32
  }
  func.func @transform_3(%arg0: i32) -> (i32, i32) {
    %c0_i32 = arith.constant 0 : i32
    %c0_i32_0 = arith.constant 0 : i32
    return %arg0, %c0_i32 : i32, i32
  }
}

</mosaic_0001>

<bundles_post_ra>
// kernel: tpu_custom_call.1
= control target key start
LH: loop header
LB: loop body
LE: loop exit
PB: predicated region body
PF: predicated region fallthrough
CT: control target
= control target key end

     0   :  { %8 = vsyncpa [#allocation3], 0  ;;  %s275_s0 = inlined_call_operand.hbm [shape: f32[2,32], index: 0, kind: input, shape index: {}]   ;;  %s276_s1 = inlined_call_operand.hbm [shape: f32[10,32], index: 1, kind: input, shape index: {}]   ;;  %s277_s2 = inlined_call_operand.vmem [shape: f32[1,10], index: 2, kind: input, shape index: {}]   ;;  %s278_s3 = inlined_call_operand.hbm [shape: f32[2,10], index: 3, kind: output, shape index: {}]  }
   0x1   :  { %9 = vsyncpa [#allocation6], 0 }
   0x2   :  { %10 = vsyncpa [#allocation4], 0  ;;  %s236_s12 = smov [#allocation2]   ;;  %s237_s14 = smov [#allocation5]  }
   0x3   :  { %s17_s13 = sshll.u32 %s236_s12, 4  ;;  %s26_s15 = sshll.u32 %s237_s14, 4  ;;  %s18_s13 = int_to_ptr.vmem [resolvable:$true] %s17_s13  ;;  %s27_s15 = int_to_ptr.vmem [resolvable:$true] %s26_s15 }
   0x4   :  { %s178_s16 = scalar_lea.vmem %s18_s13, 32  ;;  %p183_p1 = scmp.lt.s32.totalorder %s18_s13, %s18_s13 }
   0x5   :  { %p179_p0 = scmp.ne.s32.totalorder %s18_s13, %s178_s16  ;;  %p184_p2 = scmp.lt.s32.totalorder %s178_s16, %s178_s16 }
   0x7   :  { %p185_p3 = por %p184_p2, %p183_p1 }
   0x9   :  { %p186_p4 = pnand %p185_p3, %p179_p0 }
   0xb   :  { %189 = shalt.err (!%p186_p4)
}
   0xc   :  { %20 = dma.hbm_to_vmem [thread:$0]  %s275_s0, 32, %s18_s13, [#allocation3]  }
   0xd   :  { %s198_s19 = scalar_lea.vmem %s27_s15, 256  ;;  %p203_p6 = scmp.lt.s32.totalorder %s27_s15, %s27_s15 }
   0xe   :  { %p199_p5 = scmp.ne.s32.totalorder %s27_s15, %s198_s19  ;;  %p204_p7 = scmp.lt.s32.totalorder %s198_s19, %s198_s19 }
  0x10   :  { %p205_p8 = por %p204_p7, %p203_p6 }
  0x12   :  { %p206_p9 = pnand %p205_p8, %p199_p5 }
  0x14   :  { %209 = shalt.err (!%p206_p9)
}
  0x15   :  { %s238_s20 = smov 128   ;;  %s239_s21 = smov 8  }
  0x16   :  { %32 = dma.hbm_to_vmem [thread:$0]  %s276_s1, 256, %s27_s15, [#allocation6], %s238_s20, %s238_s20, %s239_s21  }
  0x17   :  { %230 = dma.done.wait [#allocation3], 32  }
  0x18   :  { %231 = vsyncadd [#allocation3], 4294967264 }
  0x19   :  { %232 = dma.done.wait [#allocation6], 256  }
  0x1a   :  { %233 = vsyncadd [#allocation6], 4294967040  ;;  %v240_v0 = vmov 0.0   ;;  %vm241_vm0 = vmmov 0   ;;  %vm51_vm1 = vcmask 261120   ;;  %v42_v2 = vld [vmem:[#allocation5] sm:$0xff] }
  0x1b   :  { %156 = vmatprep.subr.mxu0 %v240_v0  ;;  %160 = vmatprep.mubr.msk.f32.mxu0 %vm241_vm0, %v240_v0  ;;  %v43_v1 = vld [vmem:[#allocation5 + $0x8] sm:$0x3]  ;;  %v41_v3 = vld [vmem:[#allocation2] sm:$0x3]  ;;  %s242_s1 = smov [#allocation7]   ;;  %vm131_vm2 = vcmask 74752  }
  0x1c   :  { %157 = vmatpush3.xpose.msk.msra.mxu0 %vm51_vm1, %v43_v1  ;;  %v149_v4 = vld [vmem:[%s277_s2] ss:$0 sm:$0xff]  ;;  %s139_s25 = sshll.u32 %s242_s1, 4  ;;  %s140_s25 = int_to_ptr.vmem [resolvable:$true] %s139_s25 }
  0x1d   :  { %158 = vmatprep.subr.mxu0 %v240_v0  ;;  %s210_s26 = scalar_lea.vmem %s140_s25, 32  ;;  %p215_p11 = scmp.lt.s32.totalorder %s140_s25, %s140_s25 }
  0x1e   :  { %p211_p10 = scmp.ne.s32.totalorder %s140_s25, %s210_s26  ;;  %p216_p12 = scmp.lt.s32.totalorder %s210_s26, %s210_s26 }
  0x20   :  { %159 = vmatpush3.xpose.msk.msra.mxu0 %vm51_vm1, %v42_v2  ;;  %p217_p13 = por %p216_p12, %p215_p11 }
  0x22   :  { %p218_p0 = pnand %p217_p13, %p211_p10 }
  0x23   :  { %161 = vmatmul.mubr.msk.f32.vlgmr.msra.gmra.mxu0 %vm51_vm1, %v41_v3 }
  0xe3   :  { %v127_v5 = vpop.f32.mrf.mxu0 }
  0xe4   :  { %v128_v6 = vadd.f32 %v149_v4, %v127_v5 }
  0xe5   :  { %v162_v7 = vpop.f32.mrf.mxu0 }
  0xe6   :  { %132 = vst.msk [vmem:[#allocation7] sm:$0x3] %vm131_vm2, %v128_v6 }
  0xe7   :  { %221 = shalt.err (!%p218_p0)
}
  0xe8   :  { %142 = dma.vmem_to_hbm [thread:$0]  %s140_s25, 32, %s278_s3, [#allocation4]  }
  0xe9   :  { %234 = dma.done.wait [#allocation4], 32  }
  0xea   :  { %235 = vsyncadd [#allocation4], 4294967264 }
  0xeb   :  { %146 = vsyncpa [#allocation3], 1 }
  0xec   :  { %147 = vsyncpa [#allocation6], 1 }
  0xed   :  { %148 = vsyncpa [#allocation4], 1 }

</bundles_post_ra>
